<compile_context>
chip_gen: v7x
topology: tpu7x:2x2x1
jax: 0.10.0
libtpu: 0.0.40
codegen_flags: <defaults>
</compile_context>

<pallas_src>
import functools

import jax
import jax.numpy as jnp
from jax import lax
from jax.experimental import pallas as pl
from jax.experimental.pallas import tpu as pltpu

_EPS = 1e-12            # torch.nn.functional.normalize eps (applied to the norm)
_EPS2 = _EPS * _EPS     # same clamp applied to the squared norm under rsqrt


def _round_up(x, m):
    return (x + m - 1) // m * m


def _choose_row_tile_inbatch(b):
    """Query-row tile for the MXU branch.

    256 fills the 256x256 MXU on v6e/v7x; only used when it still leaves
    >= 2 grid tiles so both v7x TensorCores get work under
    dimension_semantics=("parallel",).  v5e's 128x128 MXUs are full at 128.
    """
    if b >= 512:
        return 256
    if b >= 128:
        return 128
    return _round_up(max(b, 1), 8)


def _choose_row_tile_negatives(b):
    """Row tile for the explicit-negatives branch (HBM-bandwidth bound):
    bigger tiles amortize the ~0.35us/step overhead and get closer to the
    HBM roofline, while keeping >= 2 grid tiles when possible."""
    if b >= 1024:
        return 512
    if b >= 512:
        return 256
    if b >= 128:
        return 128
    return _round_up(max(b, 1), 8)


def _vmem_limit_bytes(requested):
    """Generation-aware VMEM budget: ~85% of physical capacity
    (64 MiB/TC on v7x, 128 MiB on v5e/v6e)."""
    cap = 64 * 1024 * 1024
    try:
        info = pltpu.get_tpu_info()
        cap = int(getattr(info, "vmem_capacity_bytes", cap))
    except Exception:
        pass
    limit = int(0.85 * cap)
    return int(min(max(int(requested), 16 * 1024 * 1024), limit))


def _normalize_rows(x, extra_scale=1.0):
    """L2-normalize rows of a 2-D fp32 tile via rsqrt (EUP slot), optionally
    folding a constant scale (1/temperature) into the result.
    rsqrt(max(ss, eps^2)) == 1 / max(||x||, eps), matching F.normalize(p=2)."""
    ss = jnp.sum(x * x, axis=1, keepdims=True)
    inv = lax.rsqrt(jnp.maximum(ss, _EPS2))
    if extra_scale != 1.0:
        inv = inv * extra_scale
    return x * inv


def _normalize_rows_xla(x):
    """Wrapper-side (XLA) L2 row normalization matching F.normalize(p=2, dim=-1)."""
    x32 = x.astype(jnp.float32)
    norm = jnp.sqrt(jnp.sum(x32 * x32, axis=-1, keepdims=True))
    return x32 / jnp.maximum(norm, _EPS)


# ---------------------------------------------------------------------------
# Branch 1: negative_embeddings is None  (in-batch negatives, labels = arange)
# ---------------------------------------------------------------------------
def _inbatch_kernel(q_ref, pn_ref, o_ref, *, inv_temp, valid_b, tq):
    i = pl.program_id(0)
    b_pad = pn_ref.shape[0]

    # Only the query tile is normalized in-kernel; the positive matrix arrives
    # pre-normalized in bf16 (hoisted to the wrapper) and stays VMEM-resident
    # (constant block index -> DMA'd once).
    q = q_ref[...].astype(jnp.float32)                        # [TQ, D]
    qn = _normalize_rows(q, inv_temp)                         # 1/T folded into query
    qn_bf = qn.astype(jnp.bfloat16)                           # MXU operand

    # Diagonal logits (labels = arange): fp32 row-wise dot of the bf16-quantized
    # operands with the matching slice of the resident Pn (same quantization as
    # the MXU product -> no diag/sim precision mismatch beyond accumulation).
    start = pl.multiple_of(i * tq, tq)
    pn_tile = pn_ref[pl.ds(start, tq), :].astype(jnp.float32)  # [TQ, D]
    diag = jnp.sum(qn_bf.astype(jnp.float32) * pn_tile,
                   axis=1, keepdims=True)                      # [TQ, 1] (already /T)

    # Similarity tile on the MXU: bf16 operands, fp32 accumulation, contracting
    # both operands on their last (lane) dim -> no XLU transpose of Pn.
    sim = lax.dot_general(
        qn_bf, pn_ref[...],
        dimension_numbers=(((1,), (1,)), ((), ())),
        preferred_element_type=jnp.float32)                    # [TQ, B_pad]

    if valid_b != b_pad:  # static: only emitted when the batch was padded
        col = lax.broadcasted_iota(jnp.int32, sim.shape, 1)
        sim = jnp.where(col < valid_b, sim, -jnp.inf)

    # Stable logsumexp cross-entropy per row.
    m = jnp.max(sim, axis=1, keepdims=True)
    lse = jnp.log(jnp.sum(jnp.exp(sim - m), axis=1, keepdims=True)) + m
    per_row = lse - diag                                       # [TQ, 1]

    if valid_b != b_pad:
        row = start + lax.broadcasted_iota(jnp.int32, per_row.shape, 0)
        per_row = jnp.where(row < valid_b, per_row, 0.0)

    o_ref[...] = per_row


def contrastive_loss_inbatch(query, positive, temperature=0.07):
    b, d = query.shape
    tq = _choose_row_tile_inbatch(b)
    b_pad = _round_up(b, tq)

    q32 = query.astype(jnp.float32)
    # Hoisted: normalize the positive matrix ONCE in XLA and cast to bf16 for
    # the resident MXU operand (was previously re-done every grid step).
    pn_bf16 = _normalize_rows_xla(positive).astype(jnp.bfloat16)

    if b_pad != b:
        pad = ((0, b_pad - b), (0, 0))
        q32 = jnp.pad(q32, pad)
        pn_bf16 = jnp.pad(pn_bf16, pad)
    grid = (b_pad // tq,)

    kernel = functools.partial(_inbatch_kernel,
                               inv_temp=1.0 / float(temperature),
                               valid_b=b, tq=tq)

    cost = pl.CostEstimate(
        flops=2 * b_pad * b_pad * d + 6 * b_pad * d,
        transcendentals=b_pad * b_pad + 2 * b_pad,
        bytes_accessed=4 * b_pad * d      # query fp32 (read once)
                       + 2 * b_pad * d    # Pn bf16 (resident, read once)
                       + 4 * b_pad)       # per-row output fp32

    # Per-step VMEM: double-buffered q tile (fp32), resident bf16 Pn (x2 for
    # default double-buffering; use pipeline_mode=pl.Buffered(1) on v7x for
    # very large B), fp32 sim slab, fp32 qn temporaries, headroom.
    vmem_est = (2 * 4 * tq * d            # q blocks
                + 2 * 2 * b_pad * d       # resident Pn (bf16)
                + 4 * tq * b_pad          # sim
                + 4 * 4 * tq * d          # fp32 temporaries
                + (1 << 20))
    vmem_limit = _vmem_limit_bytes(vmem_est)

    per_row = pl.pallas_call(
        kernel,
        out_shape=jax.ShapeDtypeStruct((b_pad, 1), jnp.float32),
        grid=grid,
        in_specs=[pl.BlockSpec((tq, d), lambda i: (i, 0)),       # query tile
                  pl.BlockSpec((b_pad, d), lambda i: (0, 0))],   # Pn resident (bf16)
        out_specs=pl.BlockSpec((tq, 1), lambda i: (i, 0)),
        compiler_params=pltpu.CompilerParams(
            dimension_semantics=("parallel",),
            vmem_limit_bytes=vmem_limit),
        cost_estimate=cost,
    )(q32, pn_bf16)
    return jnp.sum(per_row) / b


# ---------------------------------------------------------------------------
# Branch 2: explicit negatives  (labels = 0)
# ---------------------------------------------------------------------------
def _negatives_kernel(q_ref, p_ref, n_ref, o_ref, *,
                      inv_temp, num_neg, d, valid_b, b_pad, tq):
    i = pl.program_id(0)

    q = q_ref[...].astype(jnp.float32)                        # [TQ, D]
    p = p_ref[...].astype(jnp.float32)                        # [TQ, D]
    qn = _normalize_rows(q, inv_temp)                         # 1/T folded into query
    pn = _normalize_rows(p)

    pos = jnp.sum(qn * pn, axis=1, keepdims=True)             # [TQ, 1]

    # Online logsumexp over {pos, neg_0..neg_{K-1}}.  Negatives arrive as a
    # lane-contiguous [TQ, K*D] block; each negative is a static pl.ds slice
    # (no sublane-strided relayout, no [TQ, K, D] broadcast temporary).
    m = pos
    s = jnp.ones_like(pos)                                    # exp(pos - m)
    for k in range(num_neg):                                  # K small & static
        nk = n_ref[:, pl.ds(k * d, d)].astype(jnp.float32)    # [TQ, D]
        nkn = _normalize_rows(nk)
        sk = jnp.sum(qn * nkn, axis=1, keepdims=True)         # [TQ, 1]
        m_new = jnp.maximum(m, sk)
        s = s * jnp.exp(m - m_new) + jnp.exp(sk - m_new)
        m = m_new

    per_row = (jnp.log(s) + m) - pos                          # CE with label 0

    if valid_b != b_pad:  # static: only emitted when the batch was padded
        start = pl.multiple_of(i * tq, tq)
        row = start + lax.broadcasted_iota(jnp.int32, per_row.shape, 0)
        per_row = jnp.where(row < valid_b, per_row, 0.0)

    o_ref[...] = per_row


def contrastive_loss_with_negatives(query, positive, negatives, temperature=0.07):
    b, d = query.shape
    k = negatives.shape[1]
    tq = _choose_row_tile_negatives(b)
    b_pad = _round_up(b, tq)

    if b_pad != b:
        pad2 = ((0, b_pad - b), (0, 0))
        query = jnp.pad(query, pad2)
        positive = jnp.pad(positive, pad2)
        negatives = jnp.pad(negatives, ((0, b_pad - b), (0, 0), (0, 0)))

    # Lane-contiguous layout for the negatives: [B_pad, K*D] so per-negative
    # slices are free pl.ds windows (D a multiple of the 128-lane granule in
    # practice) instead of sublane-strided [:, k, :] gathers.
    negatives_flat = negatives.reshape(b_pad, k * d)
    grid = (b_pad // tq,)

    kernel = functools.partial(_negatives_kernel,
                               inv_temp=1.0 / float(temperature),
                               num_neg=k, d=d, valid_b=b, b_pad=b_pad, tq=tq)

    itemsize = query.dtype.itemsize
    cost = pl.CostEstimate(
        flops=2 * b_pad * d * (k + 1) + 3 * b_pad * d * (k + 2),
        transcendentals=b_pad * (2 * k + 4),
        bytes_accessed=(b_pad * d * (k + 2)) * itemsize + 4 * b_pad)

    vmem_est = (2 * 4 * tq * d * 2        # q + p blocks (double-buffered fp32)
                + 2 * 4 * tq * k * d      # negatives block (double-buffered)
                + 8 * 4 * tq * d          # fp32 temporaries
                + (1 << 20))
    vmem_limit = _vmem_limit_bytes(vmem_est)

    per_row = pl.pallas_call(
        kernel,
        out_shape=jax.ShapeDtypeStruct((b_pad, 1), jnp.float32),
        grid=grid,
        in_specs=[pl.BlockSpec((tq, d), lambda i: (i, 0)),
                  pl.BlockSpec((tq, d), lambda i: (i, 0)),
                  pl.BlockSpec((tq, k * d), lambda i: (i, 0))],
        out_specs=pl.BlockSpec((tq, 1), lambda i: (i, 0)),
        compiler_params=pltpu.CompilerParams(
            dimension_semantics=("parallel",),
            vmem_limit_bytes=vmem_limit),
        cost_estimate=cost,
    )(query, positive, negatives_flat)
    return jnp.sum(per_row) / b


def contrastive_loss(query, positive, negatives=None, temperature=0.07):
    """Matches ContrastiveLoss.forward(query, positive, negatives=None)."""
    if negatives is None:
        return contrastive_loss_inbatch(query, positive, temperature)
    return contrastive_loss_with_negatives(query, positive, negatives, temperature)


# ---------------------------------------------------------------------------
# Pure-JAX reference (sanity check)
# ---------------------------------------------------------------------------
def _l2_normalize_ref(x, axis):
    norm = jnp.sqrt(jnp.sum(x * x, axis=axis, keepdims=True))
    return x / jnp.maximum(norm, _EPS)


def _ref_loss(query, positive, negatives=None, temperature=0.07):
    qn = _l2_normalize_ref(query.astype(jnp.float32), 1)
    pn = _l2_normalize_ref(positive.astype(jnp.float32), 1)
    if negatives is None:
        sim = qn @ pn.T / temperature
        labels = jnp.arange(sim.shape[0])
        logz = jax.nn.logsumexp(sim, axis=1)
        return jnp.mean(logz - sim[labels, labels])
    nn_ = _l2_normalize_ref(negatives.astype(jnp.float32), 2)
    pos_sim = jnp.sum(qn * pn, axis=1) / temperature
    neg_sim = jnp.einsum("bd,bkd->bk", qn, nn_) / temperature
    logits = jnp.concatenate([pos_sim[:, None], neg_sim], axis=1)
    return jnp.mean(jax.nn.logsumexp(logits, axis=1) - logits[:, 0])


if __name__ == "__main__":
    B, D, K = 8, 128, 4
    key = jax.random.PRNGKey(0)
    kq, kp, kn = jax.random.split(key, 3)
    query = jax.random.normal(kq, (B, D), dtype=jnp.float32)
    positive = jax.random.normal(kp, (B, D), dtype=jnp.float32)
    negatives = jax.random.normal(kn, (B, K, D), dtype=jnp.float32)

    # Branch 1: in-batch negatives (bf16 MXU path -> looser tolerance).
    loss_inbatch = jax.block_until_ready(
        contrastive_loss(query, positive, temperature=0.07))
    ref_inbatch = _ref_loss(query, positive, None, 0.07)
    assert jnp.allclose(loss_inbatch, ref_inbatch, atol=5e-2, rtol=5e-2), (
        loss_inbatch, ref_inbatch)

    # Branch 1 with a batch that is NOT a multiple of the row tile and spans
    # multiple grid tiles (exercises padding + masking + resident-Pn reuse).
    Bp = 192
    q2 = jax.random.normal(jax.random.PRNGKey(1), (Bp, D), dtype=jnp.float32)
    p2 = jax.random.normal(jax.random.PRNGKey(2), (Bp, D), dtype=jnp.float32)
    loss_pad = jax.block_until_ready(contrastive_loss(q2, p2, temperature=0.07))
    ref_pad = _ref_loss(q2, p2, None, 0.07)
    assert jnp.allclose(loss_pad, ref_pad, atol=5e-2, rtol=5e-2), (loss_pad, ref_pad)

    # Branch 2: explicit negatives (all-fp32 VPU path -> tight tolerance).
    loss_negs = jax.block_until_ready(
        contrastive_loss(query, positive, negatives, temperature=0.07))
    ref_negs = _ref_loss(query, positive, negatives, 0.07)
    assert jnp.allclose(loss_negs, ref_negs, atol=1e-4, rtol=1e-4), (
        loss_negs, ref_negs)

    print("KERNEL_OK")
</pallas_src>

<mosaic_0001>
module attributes {stable_mosaic.version = 11 : i64} {
  func.func @_inbatch_kernel(%arg0: i32, %arg1: memref<8x128xf32, #tpu.memory_space<vmem>>, %arg2: memref<8x128xbf16, #tpu.memory_space<vmem>>, %arg3: memref<8x1xf32, #tpu.memory_space<vmem>>) attributes {dimension_semantics = [#tpu.dimension_semantics<parallel>], iteration_bounds = array<i64: 1>, scalar_prefetch = 0 : i64, scratch_operands = 0 : i64, tpu.core_type = #tpu.core_type<tc>, window_params = [{transform_indices = @transform_0, window_bounds = array<i64: 8, 128>}, {pipeline_mode = #tpu.pipeline_mode<synchronous>, transform_indices = @transform_1, window_bounds = array<i64: 8, 128>}, {transform_indices = @transform_2, window_bounds = array<i64: 8, 1>}]} {
    %c0 = arith.constant 0 : index
    %c0_0 = arith.constant 0 : index
    %0 = vector.load %arg1[%c0, %c0_0] : memref<8x128xf32, #tpu.memory_space<vmem>>, vector<8x128xf32>
    %1 = arith.mulf %0, %0 : vector<8x128xf32>
    %cst = arith.constant dense<0.000000e+00> : vector<8xf32>
    %2 = vector.multi_reduction <add>, %1, %cst [1] : vector<8x128xf32> to vector<8xf32>
    %3 = vector.shape_cast %2 : vector<8xf32> to vector<8x1xf32>
    %cst_1 = arith.constant 1.000000e-24 : f32
    %4 = vector.broadcast %cst_1 : f32 to vector<8x1xf32>
    %5 = arith.maximumf %3, %4 : vector<8x1xf32>
    %6 = math.rsqrt %5 : vector<8x1xf32>
    %cst_2 = arith.constant 14.2857141 : f32
    %7 = vector.broadcast %cst_2 : f32 to vector<8x1xf32>
    %8 = arith.mulf %6, %7 : vector<8x1xf32>
    %9 = vector.broadcast %8 : vector<8x1xf32> to vector<8x128xf32>
    %10 = arith.mulf %0, %9 : vector<8x128xf32>
    %11 = arith.truncf %10 : vector<8x128xf32> to vector<8x128xbf16>
    %c8_i32 = arith.constant 8 : i32
    %12 = arith.muli %arg0, %c8_i32 : i32
    %13 = tpu.assume_multiple %12, 8 : i32
    %14 = arith.index_cast %13 : i32 to index
    %c0_3 = arith.constant 0 : index
    %15 = vector.load %arg2[%14, %c0_3] : memref<8x128xbf16, #tpu.memory_space<vmem>>, vector<8x128xbf16>
    %16 = arith.extf %15 : vector<8x128xbf16> to vector<8x128xf32>
    %17 = arith.extf %11 : vector<8x128xbf16> to vector<8x128xf32>
    %18 = arith.mulf %17, %16 : vector<8x128xf32>
    %cst_4 = arith.constant dense<0.000000e+00> : vector<8xf32>
    %19 = vector.multi_reduction <add>, %18, %cst_4 [1] : vector<8x128xf32> to vector<8xf32>
    %20 = vector.shape_cast %19 : vector<8xf32> to vector<8x1xf32>
    %c0_5 = arith.constant 0 : index
    %c0_6 = arith.constant 0 : index
    %21 = vector.load %arg2[%c0_5, %c0_6] : memref<8x128xbf16, #tpu.memory_space<vmem>>, vector<8x128xbf16>
    %cst_7 = arith.constant dense<0.000000e+00> : vector<8x8xf32>
    %22 = tpu.matmul %11, %21, %cst_7 {dimension_numbers = #tpu.dot_dimension_numbers<[1], [1], [0], [0], [0, 0, 1, 0], [], []>} : vector<8x128xbf16>, vector<8x128xbf16>, vector<8x8xf32> -> vector<8x8xf32>
    %cst_8 = arith.constant dense<0xFF800000> : vector<8xf32>
    %23 = vector.multi_reduction <maximumf>, %22, %cst_8 [1] : vector<8x8xf32> to vector<8xf32>
    %24 = vector.shape_cast %23 : vector<8xf32> to vector<8x1xf32>
    %25 = vector.broadcast %24 : vector<8x1xf32> to vector<8x8xf32>
    %26 = arith.subf %22, %25 : vector<8x8xf32>
    %27 = math.exp %26 : vector<8x8xf32>
    %cst_9 = arith.constant dense<0.000000e+00> : vector<8xf32>
    %28 = vector.multi_reduction <add>, %27, %cst_9 [1] : vector<8x8xf32> to vector<8xf32>
    %29 = vector.shape_cast %28 : vector<8xf32> to vector<8x1xf32>
    %30 = math.log %29 : vector<8x1xf32>
    %31 = arith.addf %30, %24 : vector<8x1xf32>
    %32 = arith.subf %31, %20 : vector<8x1xf32>
    %c0_10 = arith.constant 0 : index
    %c0_11 = arith.constant 0 : index
    %33 = vector.load %arg3[%c0_10, %c0_11] : memref<8x1xf32, #tpu.memory_space<vmem>>, vector<8x1xf32>
    tpu.vector_store %arg3[%c0_10, %c0_11], %32 {strides = array<i32>} : memref<8x1xf32, #tpu.memory_space<vmem>>, vector<8x1xf32>,
    return
  }
  func.func @transform_0(%arg0: i32) -> (i32, i32) {
    %c0_i32 = arith.constant 0 : i32
    %c0_i32_0 = arith.constant 0 : i32
    return %arg0, %c0_i32 : i32, i32
  }
  func.func @transform_1(%arg0: i32) -> (i32, i32) {
    %c0_i32 = arith.constant 0 : i32
    %c0_i32_0 = arith.constant 0 : i32
    %c0_i32_1 = arith.constant 0 : i32
    return %c0_i32, %c0_i32_0 : i32, i32
  }
  func.func @transform_2(%arg0: i32) -> (i32, i32) {
    %c0_i32 = arith.constant 0 : i32
    %c0_i32_0 = arith.constant 0 : i32
    return %arg0, %c0_i32 : i32, i32
  }
}

</mosaic_0001>

<bundles_post_ra>
// kernel: tpu_custom_call.1
= control target key start
LH: loop header
LB: loop body
LE: loop exit
PB: predicated region body
PF: predicated region fallthrough
CT: control target
= control target key end

     0   :  { %7 = vsyncpa [#allocation3], 0  ;;  %s233_s0 = inlined_call_operand.hbm [shape: f32[8,128], index: 0, kind: input, shape index: {}]   ;;  %s234_s1 = inlined_call_operand.hbm [shape: bf16[8,128], index: 1, kind: input, shape index: {}]   ;;  %s235_s2 = inlined_call_operand.vmem [shape: f32[8,1], index: 2, kind: output, shape index: {}]  }
   0x1   :  { %8 = vsyncpa [#allocation5], 0  ;;  %s187_s9 = smov [#allocation2]   ;;  %s188_s11 = smov [#allocation4]  }
   0x2   :  { %s15_s10 = sshll.u32 %s187_s9, 4  ;;  %s25_s12 = sshll.u32 %s188_s11, 4  ;;  %s16_s10 = int_to_ptr.vmem [resolvable:$true] %s15_s10  ;;  %s26_s12 = int_to_ptr.vmem [resolvable:$true] %s25_s12 }
   0x3   :  { %s139_s15 = scalar_lea.hbm %s233_s0, 128 }
   0x4   :  { %p140_p0 = scmp.ne.s32.totalorder %s233_s0, %s139_s15  ;;  %p143_p1 = scmp.lt.u32.totalorder %s139_s15, %s233_s0 }
   0x6   :  { %p145_p2 = pnand %p143_p1, %p140_p0 }
   0x8   :  { %148 = shalt.err (!%p145_p2)
}
   0x9   :  { %s149_s20 = scalar_lea.vmem %s16_s10, 128  ;;  %p154_p4 = scmp.lt.s32.totalorder %s16_s10, %s16_s10 }
   0xa   :  { %p150_p3 = scmp.ne.s32.totalorder %s16_s10, %s149_s20  ;;  %p155_p5 = scmp.lt.s32.totalorder %s149_s20, %s149_s20 }
   0xc   :  { %p156_p6 = por %p155_p5, %p154_p4 }
   0xe   :  { %p157_p7 = pnand %p156_p6, %p150_p3 }
  0x10   :  { %160 = shalt.err (!%p157_p7)
}
  0x11   :  { %18 = dma.hbm_to_vmem [thread:$0]  %s233_s0, 128, %s16_s10, [#allocation3]  }
  0x12   :  { %s161_s25 = scalar_lea.hbm %s234_s1, 64 }
  0x13   :  { %p162_p8 = scmp.ne.s32.totalorder %s234_s1, %s161_s25  ;;  %p165_p9 = scmp.lt.u32.totalorder %s161_s25, %s234_s1 }
  0x15   :  { %p167_p10 = pnand %p165_p9, %p162_p8 }
  0x17   :  { %170 = shalt.err (!%p167_p10)
}
  0x18   :  { %s171_s30 = scalar_lea.vmem %s26_s12, 64  ;;  %p176_p12 = scmp.lt.s32.totalorder %s26_s12, %s26_s12 }
  0x19   :  { %p172_p11 = scmp.ne.s32.totalorder %s26_s12, %s171_s30  ;;  %p177_p13 = scmp.lt.s32.totalorder %s171_s30, %s171_s30 }
  0x1b   :  { %p178_p0 = por %p177_p13, %p176_p12 }
  0x1d   :  { %p179_p1 = pnand %p178_p0, %p172_p11 }
  0x1f   :  { %182 = shalt.err (!%p179_p1)
}
  0x20   :  { %28 = dma.hbm_to_vmem [thread:$0]  %s234_s1, 64, %s26_s12, [#allocation5]  }
  0x21   :  { %183 = dma.done.wait [#allocation3], 128  }
  0x22   :  { %184 = vsyncadd [#allocation3], 4294967168 }
  0x23   :  { %185 = dma.done.wait [#allocation5], 64  }
  0x24   :  { %186 = vsyncadd [#allocation5], 4294967232  ;;  %v36_v0 = vld [vmem:[#allocation2] sm:$0xff]  ;;  %v189_v2 = vmov 0.0   ;;  %v56_v3 = vld [vmem:[#allocation4] sm:$0xf] }
  0x25   :  { %v37_v1 = vmul.f32 %v36_v0, %v36_v0  ;;  %123 = vmatprep.subr.bf16.mxu0 %v189_v2  ;;  %vm190_vm0 = vmmov 0   ;;  %vm97_vm1 = vcmask 64512   ;;  %v50_v18 = vld [vmem:[#allocation4] sm:$0xf]  ;;  %vm111_vm2 = vcmask 7168  }
  0x26   :  { %124 = vmatpush3.bf16.xpose.msra.mxu0 %v56_v3  ;;  %125 = vmatprep.mubr.msk.bf16.mxu0 %vm190_vm0, %v189_v2  ;;  %v51_v20 = vunpack.c.l.bf16 %v50_v18 }
  0x27   :  { %38 = vadd.xlane.f32.xlu0 %v37_v1 }
  0xb4   :  { %v39_v4 = vpop.xlane.xlu0 %38 }
  0xb5   :  { %v40_v5 = vmax.f32 %v39_v4, 1e-24 }
  0xb7   :  { %133 = vrsqrt.f32 %v40_v5 }
  0xc1   :  { %v134_v6 = vpop.eup %133 }
  0xc2   :  { %v42_v7 = vmul.f32 14.285714, %v134_v6 }
  0xc4   :  { %v43_v8 = vmul.f32 %v42_v7, %v36_v0 }
  0xc6   :  { %v44_v9 = vpack.c.bf16 %v43_v8, %v43_v8 }
  0xc8   :  { %126 = vmatmul.mubr.bf16.vlgmr.msra.gmra.mrb[0].mxu0 %v44_v9  ;;  %v52_v21 = vunpack.c.l.bf16 %v44_v9 }
  0xca   :  { %v53_v23 = vmul.f32 %v52_v21, %v51_v20 }
 0x19b   :  { %v91_v10 = vpop.f32.mrb[0].mxu0 }
 0x19c   :  { %v127_v11 = vpop.f32.mrb[1].mxu0  ;;  %v98_v12 = vsel %vm97_vm1, %v91_v10, -inf }
 0x19d   :  { %99 = vmax.xlane.f32.xlu0 %v98_v12  ;;  %v94_v13 = vpop.f32.mrb[2].mxu0 }
 0x19e   :  { %v128_v14 = vpop.f32.mrb[3].mxu0 }
 0x22a   :  { %v100_v15 = vpop.xlane.xlu0 %99 }
 0x22b   :  { %v101_v16 = vsub.f32 %v91_v10, %v100_v15 }
 0x22d   :  { %v102_v17 = vmul.f32 1.442695, %v101_v16 }
 0x22f   :  { %135 = vpow2.f32 %v102_v17 }
 0x239   :  { %v136_v19 = vpop.eup %135 }
 0x23a   :  { %v104_v22 = vsel %vm97_vm1, %v136_v19, 0.0 }
 0x23b   :  { %105 = vadd.xlane.f32.xlu1 %v104_v22 }
 0x23f   :  { %54 = vadd.xlane.f32.xlu1 %v53_v23 }
 0x2c8   :  { %v106_v24 = vpop.xlane.xlu1 %105 }
 0x2c9   :  { %137 = vlog2.f32 %v106_v24 }
 0x2cc   :  { %v55_v28 = vpop.xlane.xlu1 %54 }
 0x2d3   :  { %v138_v25 = vpop.eup %137 }
 0x2d4   :  { %v108_v26 = vmul.f32 0.6931472, %v138_v25 }
 0x2d6   :  { %v109_v27 = vadd.f32 %v108_v26, %v100_v15 }
 0x2d8   :  { %v110_v29 = vsub.f32 %v109_v27, %v55_v28 }
 0x2da   :  { %112 = vst.msk [vmem:[%s235_s2] sm:$0xff] %vm111_vm2, %v110_v29 }
 0x2db   :  { %117 = vsyncpa [#allocation3], 1 }
 0x2dc   :  { %118 = vsyncpa [#allocation5], 1 }

</bundles_post_ra>
